<compile_context>
chip_gen: v5e
topology: v5e:2x2
jax: 0.10.0
libtpu: 0.0.40
codegen_flags: <defaults>
</compile_context>

<pallas_src>
import math
import functools

import jax
import jax.numpy as jnp
from jax.experimental import pallas as pl
from jax.experimental.pallas import tpu as pltpu


# ---------------- configuration (static, baked into the kernel) -------------
GRID_MIN = -2.0
GRID_MAX = 2.0
NUM_GRIDS = 8
NU = 1.5                      # only nu=1.5 branch implemented (module default)
LENGTHSCALE = 1.0
LN_EPS = 1e-5
SQRT3 = math.sqrt(3.0)

# grid points are a fixed (non-trainable) buffer -> bake as Python constants
GRID_VALS = [GRID_MIN + (GRID_MAX - GRID_MIN) * g / (NUM_GRIDS - 1)
             for g in range(NUM_GRIDS)]


# ------------------------------- kernel -------------------------------------
def _maternkan_kernel(x_ref, gamma_ref, beta_ref, c_ref,
                      spline_w_ref, base_w_ref, base_b_ref, o_ref):
    # x_ref: (TN, D) tile of rows; weights/constants are resident full-size.
    x = x_ref[...].astype(jnp.float32)                        # (TN, D) raw input

    # ---- LayerNorm over last dim (eps=1e-5, biased variance, affine) ----
    mean = jnp.mean(x, axis=-1, keepdims=True)
    var = jnp.mean((x - mean) ** 2, axis=-1, keepdims=True)
    xn = (x - mean) * jax.lax.rsqrt(var + LN_EPS)
    xn = xn * gamma_ref[...] + beta_ref[...]                  # (TN, D)

    # ---- single lane-broadcast to the lane-dense (TN, D*G) basis layout ----
    # column k -> feature (k % D), grid point (k // D)
    xn_b = jnp.concatenate([xn] * NUM_GRIDS, axis=-1)         # (TN, D*G)
    dist = jnp.abs(xn_b - c_ref[...]) * (1.0 / LENGTHSCALE)   # (TN, D*G)
    sd = SQRT3 * dist
    # Direct Matern-1.5 basis: one exp on the 128-wide tile (EUP slot),
    # overflow-free (argument is always <= 0).
    basis = (1.0 + sd) * jnp.exp(-sd)                         # (TN, D*G)

    # ---- single fused MXU matmul for the spline path (bf16 operands) ----
    acc = jnp.dot(basis.astype(jnp.bfloat16), spline_w_ref[...],
                  preferred_element_type=jnp.float32)         # (TN, O)

    # ---- base update: silu(raw x) @ W_base^T + b_base ----
    base_act = x * jax.nn.sigmoid(x)                          # silu
    acc = acc + jnp.dot(base_act.astype(jnp.bfloat16), base_w_ref[...],
                        preferred_element_type=jnp.float32)
    acc = acc + base_b_ref[...]

    # NOTE: O < 128 lanes -> masked vst here; the lane-dense repack variant
    # ((TN,O)->(TN*O/128,128) in-kernel reshape) is a further lever but needs a
    # bundle-dump check that the relayout beats the masked stores it removes.
    o_ref[...] = acc.astype(o_ref.dtype)


def _round_up(v, m):
    return ((v + m - 1) // m) * m


# ------------------------------- wrapper -------------------------------------
@functools.partial(jax.jit, static_argnames=("row_tile",))
def maternkan_forward(x, gamma, beta, spline_w2, base_w_t, base_b,
                      row_tile=2048):
    """x: (..., D) -> (..., O).

    spline_w2 : (D*G, O) bf16, row index = g*D + d (see prepare_weights)
    base_w_t  : (D, O)   bf16
    gamma/beta: LayerNorm affine params, shape (D,) or (1, D)
    row_tile  : rows per grid step.  2048 default; sweepable higher on
                v5e/v6e (more VMEM headroom), keep <= ~4096 on v7x.
    """
    in_dim = x.shape[-1]
    out_dim = base_w_t.shape[-1]
    k_dim = in_dim * NUM_GRIDS
    lead = x.shape[:-1]
    n = math.prod(lead) if lead else 1
    x2 = x.reshape(n, in_dim)

    gamma = gamma.reshape(1, in_dim).astype(jnp.float32)
    beta = beta.reshape(1, in_dim).astype(jnp.float32)
    base_b = base_b.reshape(1, out_dim)

    # Row-tile selection (no padding: ragged tail blocks are masked by Pallas).
    if n > row_tile:
        tn = _round_up(row_tile, 8)                   # big tile, ragged tail
    elif n > 256:
        tn = _round_up(pl.cdiv(n, 2), 8)              # >=2 steps for v7x cores
    else:
        tn = n                                        # single full-array block
    grid_rows = pl.cdiv(n, tn)

    # Per-column grid constants matching the in-kernel basis column order
    # (column k -> feature k % D, grid point k // D).
    c_row = jnp.asarray([[GRID_VALS[k // in_dim] for k in range(k_dim)]],
                        jnp.float32)                                    # (1, D*G)

    grid_spec = pltpu.PrefetchScalarGridSpec(
        num_scalar_prefetch=0,
        grid=(grid_rows,),
        in_specs=[
            pl.BlockSpec((tn, in_dim), lambda i: (i, 0)),        # x rows
            pl.BlockSpec((1, in_dim), lambda i: (0, 0)),         # gamma
            pl.BlockSpec((1, in_dim), lambda i: (0, 0)),         # beta
            pl.BlockSpec((1, k_dim), lambda i: (0, 0)),          # grid values
            pl.BlockSpec((k_dim, out_dim), lambda i: (0, 0)),    # spline W (D*G, O)
            pl.BlockSpec((in_dim, out_dim), lambda i: (0, 0)),   # base W (D, O)
            pl.BlockSpec((1, out_dim), lambda i: (0, 0)),        # base bias
        ],
        out_specs=pl.BlockSpec((tn, out_dim), lambda i: (i, 0)),
    )

    out = pl.pallas_call(
        _maternkan_kernel,
        out_shape=jax.ShapeDtypeStruct((n, out_dim), x.dtype),
        grid_spec=grid_spec,
        compiler_params=pltpu.CompilerParams(
            dimension_semantics=("parallel",),
            vmem_limit_bytes=48 * 1024 * 1024),
    )(x2, gamma, beta, c_row, spline_w2, base_w_t, base_b)

    return out.reshape(*lead, out_dim)


def prepare_weights(spline_w, base_w):
    """PyTorch layouts -> kernel layouts (done once, outside the kernel).

    spline_w : (O, D*G)  with flatten index d*G + g   (nn.Linear(D*G, O).weight)
    base_w   : (O, D)                                  (nn.Linear(D, O).weight)
    Returns spline_w2 (D*G, O) bf16 with row index g*D + d, and base_w_t (D, O) bf16.
    """
    o_dim, dg = spline_w.shape
    d = base_w.shape[1]
    g = dg // d
    spline_w2 = jnp.transpose(spline_w.reshape(o_dim, d, g), (2, 1, 0))  # (G, D, O)
    spline_w2 = spline_w2.reshape(g * d, o_dim).astype(jnp.bfloat16)     # row = g*D + d
    base_w_t = base_w.T.astype(jnp.bfloat16)                             # (D, O)
    return spline_w2, base_w_t


# --------------------------- pure-JAX reference -------------------------------
def maternkan_reference(x, gamma, beta, spline_w, base_w, base_b):
    """spline_w: (O, D*G), base_w: (O, D) — PyTorch Linear weight layout."""
    mean = jnp.mean(x, axis=-1, keepdims=True)
    var = jnp.mean((x - mean) ** 2, axis=-1, keepdims=True)
    xn = (x - mean) / jnp.sqrt(var + LN_EPS) * gamma.reshape(-1) + beta.reshape(-1)
    grid = jnp.asarray(GRID_VALS, jnp.float32)
    dist = jnp.abs(xn[..., None] - grid) / LENGTHSCALE               # (..., D, G)
    basis = (1.0 + SQRT3 * dist) * jnp.exp(-SQRT3 * dist)
    basis_flat = basis.reshape(*basis.shape[:-2], -1)                # (..., D*G)
    ret = basis_flat @ spline_w.T
    base = (x * jax.nn.sigmoid(x)) @ base_w.T + base_b.reshape(-1)
    return ret + base


# ---------------------------------- main --------------------------------------
if __name__ == "__main__":
    # small shapes: batch=2, seq=8, input_dim=16, output_dim=32, num_grids=8
    B, S, D, O = 2, 8, 16, 32
    key = jax.random.PRNGKey(0)
    kx, ksw, kbw, kbb, kx2, kx3 = jax.random.split(key, 6)

    x = jax.random.normal(kx, (B, S, D), dtype=jnp.float32)

    # deterministic synthetic parameters (shapes per module __init__)
    gamma = jnp.ones((1, D), jnp.float32)          # LayerNorm weight
    beta = jnp.zeros((1, D), jnp.float32)          # LayerNorm bias
    spline_w = jax.random.normal(ksw, (O, D * NUM_GRIDS), jnp.float32) * 0.1
    base_w = jax.random.normal(kbw, (O, D), jnp.float32) * 0.1
    base_b = jax.random.normal(kbb, (1, O), jnp.float32) * 0.1

    spline_w2, base_w_t = prepare_weights(spline_w, base_w)

    # --- small-shape check (single full-array block) ---
    out = maternkan_forward(x, gamma, beta, spline_w2, base_w_t, base_b)
    out = jax.block_until_ready(out)
    ref = maternkan_reference(x, gamma, beta, spline_w, base_w, base_b)
    assert out.shape == (B, S, O)
    # bf16 MXU operands with f32 accumulation -> loosened tolerance
    assert jnp.allclose(out, ref, atol=5e-2, rtol=5e-2), \
        f"mismatch: max abs err {jnp.max(jnp.abs(out - ref))}"

    # --- medium-N check: 2 grid steps + ragged (masked) last block ---
    x_big = jax.random.normal(kx2, (4, 130, D), dtype=jnp.float32)  # N=520 rows
    out_big = maternkan_forward(x_big, gamma, beta, spline_w2, base_w_t, base_b)
    out_big = jax.block_until_ready(out_big)
    ref_big = maternkan_reference(x_big, gamma, beta, spline_w, base_w, base_b)
    assert out_big.shape == (4, 130, O)
    assert jnp.allclose(out_big, ref_big, atol=5e-2, rtol=5e-2), \
        f"mismatch: max abs err {jnp.max(jnp.abs(out_big - ref_big))}"

    # --- N not a multiple of 8 (single full-array block path) ---
    x_odd = jax.random.normal(kx3, (3, 35, D), dtype=jnp.float32)   # N=105 rows
    out_odd = maternkan_forward(x_odd, gamma, beta, spline_w2, base_w_t, base_b)
    out_odd = jax.block_until_ready(out_odd)
    ref_odd = maternkan_reference(x_odd, gamma, beta, spline_w, base_w, base_b)
    assert out_odd.shape == (3, 35, O)
    assert jnp.allclose(out_odd, ref_odd, atol=5e-2, rtol=5e-2), \
        f"mismatch: max abs err {jnp.max(jnp.abs(out_odd - ref_odd))}"

    print("KERNEL_OK")
</pallas_src>

<mosaic_0001>
module attributes {stable_mosaic.version = 11 : i64} {
  func.func @_maternkan_kernel(%arg0: i32, %arg1: memref<16x16xf32, #tpu.memory_space<vmem>>, %arg2: memref<1x16xf32, #tpu.memory_space<vmem>>, %arg3: memref<1x16xf32, #tpu.memory_space<vmem>>, %arg4: memref<1x128xf32, #tpu.memory_space<vmem>>, %arg5: memref<128x32xbf16, #tpu.memory_space<vmem>>, %arg6: memref<16x32xbf16, #tpu.memory_space<vmem>>, %arg7: memref<1x32xf32, #tpu.memory_space<vmem>>, %arg8: memref<16x32xf32, #tpu.memory_space<vmem>>) attributes {dimension_semantics = [#tpu.dimension_semantics<parallel>], iteration_bounds = array<i64: 1>, scalar_prefetch = 0 : i64, scratch_operands = 0 : i64, tpu.core_type = #tpu.core_type<tc>, window_params = [{transform_indices = @transform_0, window_bounds = array<i64: 16, 16>}, {pipeline_mode = #tpu.pipeline_mode<synchronous>, transform_indices = @transform_1, window_bounds = array<i64: 1, 16>}, {pipeline_mode = #tpu.pipeline_mode<synchronous>, transform_indices = @transform_2, window_bounds = array<i64: 1, 16>}, {pipeline_mode = #tpu.pipeline_mode<synchronous>, transform_indices = @transform_3, window_bounds = array<i64: 1, 128>}, {pipeline_mode = #tpu.pipeline_mode<synchronous>, transform_indices = @transform_4, window_bounds = array<i64: 128, 32>}, {pipeline_mode = #tpu.pipeline_mode<synchronous>, transform_indices = @transform_5, window_bounds = array<i64: 16, 32>}, {pipeline_mode = #tpu.pipeline_mode<synchronous>, transform_indices = @transform_6, window_bounds = array<i64: 1, 32>}, {transform_indices = @transform_7, window_bounds = array<i64: 16, 32>}]} {
    %c0 = arith.constant 0 : index
    %c0_0 = arith.constant 0 : index
    %0 = vector.load %arg1[%c0, %c0_0] : memref<16x16xf32, #tpu.memory_space<vmem>>, vector<16x16xf32>
    %cst = arith.constant dense<0.000000e+00> : vector<16xf32>
    %1 = vector.multi_reduction <add>, %0, %cst [1] : vector<16x16xf32> to vector<16xf32>
    %2 = vector.shape_cast %1 : vector<16xf32> to vector<16x1xf32>
    %cst_1 = arith.constant 1.600000e+01 : f32
    %3 = vector.broadcast %cst_1 : f32 to vector<16x1xf32>
    %4 = arith.divf %2, %3 : vector<16x1xf32>
    %5 = vector.broadcast %4 : vector<16x1xf32> to vector<16x16xf32>
    %6 = arith.subf %0, %5 : vector<16x16xf32>
    %7 = arith.mulf %6, %6 : vector<16x16xf32>
    %cst_2 = arith.constant dense<0.000000e+00> : vector<16xf32>
    %8 = vector.multi_reduction <add>, %7, %cst_2 [1] : vector<16x16xf32> to vector<16xf32>
    %9 = vector.shape_cast %8 : vector<16xf32> to vector<16x1xf32>
    %cst_3 = arith.constant 1.600000e+01 : f32
    %10 = vector.broadcast %cst_3 : f32 to vector<16x1xf32>
    %11 = arith.divf %9, %10 : vector<16x1xf32>
    %12 = vector.broadcast %4 : vector<16x1xf32> to vector<16x16xf32>
    %13 = arith.subf %0, %12 : vector<16x16xf32>
    %cst_4 = arith.constant 9.99999974E-6 : f32
    %14 = vector.broadcast %cst_4 : f32 to vector<16x1xf32>
    %15 = arith.addf %11, %14 : vector<16x1xf32>
    %16 = math.rsqrt %15 : vector<16x1xf32>
    %17 = vector.broadcast %16 : vector<16x1xf32> to vector<16x16xf32>
    %18 = arith.mulf %13, %17 : vector<16x16xf32>
    %c0_5 = arith.constant 0 : index
    %c0_6 = arith.constant 0 : index
    %19 = vector.load %arg2[%c0_5, %c0_6] : memref<1x16xf32, #tpu.memory_space<vmem>>, vector<1x16xf32>
    %20 = vector.broadcast %19 : vector<1x16xf32> to vector<16x16xf32>
    %21 = arith.mulf %18, %20 : vector<16x16xf32>
    %c0_7 = arith.constant 0 : index
    %c0_8 = arith.constant 0 : index
    %22 = vector.load %arg3[%c0_7, %c0_8] : memref<1x16xf32, #tpu.memory_space<vmem>>, vector<1x16xf32>
    %23 = vector.broadcast %22 : vector<1x16xf32> to vector<16x16xf32>
    %24 = arith.addf %21, %23 : vector<16x16xf32>
    %25 = tpu.concatenate %24, %24, %24, %24, %24, %24, %24, %24 in 1 : vector<16x16xf32>, vector<16x16xf32>, vector<16x16xf32>, vector<16x16xf32>, vector<16x16xf32>, vector<16x16xf32>, vector<16x16xf32>, vector<16x16xf32> -> vector<16x128xf32>
    %c0_9 = arith.constant 0 : index
    %c0_10 = arith.constant 0 : index
    %26 = vector.load %arg4[%c0_9, %c0_10] : memref<1x128xf32, #tpu.memory_space<vmem>>, vector<1x128xf32>
    %27 = vector.broadcast %26 : vector<1x128xf32> to vector<16x128xf32>
    %28 = arith.subf %25, %27 : vector<16x128xf32>
    %29 = math.absf %28 : vector<16x128xf32>
    %cst_11 = arith.constant 1.000000e+00 : f32
    %30 = vector.broadcast %cst_11 : f32 to vector<16x128xf32>
    %31 = arith.mulf %29, %30 : vector<16x128xf32>
    %cst_12 = arith.constant 1.73205078 : f32
    %32 = vector.broadcast %cst_12 : f32 to vector<16x128xf32>
    %33 = arith.mulf %32, %31 : vector<16x128xf32>
    %cst_13 = arith.constant 1.000000e+00 : f32
    %34 = vector.broadcast %cst_13 : f32 to vector<16x128xf32>
    %35 = arith.addf %34, %33 : vector<16x128xf32>
    %cst_14 = arith.constant 0.000000e+00 : f32
    %36 = vector.broadcast %cst_14 : f32 to vector<16x128xf32>
    %37 = arith.subf %36, %33 : vector<16x128xf32>
    %38 = math.exp %37 : vector<16x128xf32>
    %39 = arith.mulf %35, %38 : vector<16x128xf32>
    %40 = arith.truncf %39 : vector<16x128xf32> to vector<16x128xbf16>
    %c0_15 = arith.constant 0 : index
    %c0_16 = arith.constant 0 : index
    %41 = vector.load %arg5[%c0_15, %c0_16] : memref<128x32xbf16, #tpu.memory_space<vmem>>, vector<128x32xbf16>
    %cst_17 = arith.constant dense<0.000000e+00> : vector<16x32xf32>
    %42 = tpu.matmul %40, %41, %cst_17 {dimension_numbers = #tpu.dot_dimension_numbers<[1], [0], [0], [1], [0, 0, 1, 1], [], []>} : vector<16x128xbf16>, vector<128x32xbf16>, vector<16x32xf32> -> vector<16x32xf32>
    %43 = arith.negf %0 : vector<16x16xf32>
    %44 = math.exp %43 : vector<16x16xf32>
    %cst_18 = arith.constant 1.000000e+00 : f32
    %45 = vector.broadcast %cst_18 : f32 to vector<16x16xf32>
    %46 = arith.addf %45, %44 : vector<16x16xf32>
    %47 = arith.divf %45, %46 : vector<16x16xf32>
    %48 = arith.mulf %0, %47 : vector<16x16xf32>
    %49 = arith.truncf %48 : vector<16x16xf32> to vector<16x16xbf16>
    %c0_19 = arith.constant 0 : index
    %c0_20 = arith.constant 0 : index
    %50 = vector.load %arg6[%c0_19, %c0_20] : memref<16x32xbf16, #tpu.memory_space<vmem>>, vector<16x32xbf16>
    %cst_21 = arith.constant dense<0.000000e+00> : vector<16x32xf32>
    %51 = tpu.matmul %49, %50, %cst_21 {dimension_numbers = #tpu.dot_dimension_numbers<[1], [0], [0], [1], [0, 0, 1, 1], [], []>} : vector<16x16xbf16>, vector<16x32xbf16>, vector<16x32xf32> -> vector<16x32xf32>
    %52 = arith.addf %42, %51 : vector<16x32xf32>
    %c0_22 = arith.constant 0 : index
    %c0_23 = arith.constant 0 : index
    %53 = vector.load %arg7[%c0_22, %c0_23] : memref<1x32xf32, #tpu.memory_space<vmem>>, vector<1x32xf32>
    %54 = vector.broadcast %53 : vector<1x32xf32> to vector<16x32xf32>
    %55 = arith.addf %52, %54 : vector<16x32xf32>
    %c0_24 = arith.constant 0 : index
    %c0_25 = arith.constant 0 : index
    %56 = vector.load %arg8[%c0_24, %c0_25] : memref<16x32xf32, #tpu.memory_space<vmem>>, vector<16x32xf32>
    tpu.vector_store %arg8[%c0_24, %c0_25], %55 {strides = array<i32>} : memref<16x32xf32, #tpu.memory_space<vmem>>, vector<16x32xf32>,
    return
  }
  func.func @transform_0(%arg0: i32) -> (i32, i32) {
    %c0_i32 = arith.constant 0 : i32
    %c0_i32_0 = arith.constant 0 : i32
    return %arg0, %c0_i32 : i32, i32
  }
  func.func @transform_1(%arg0: i32) -> (i32, i32) {
    %c0_i32 = arith.constant 0 : i32
    %c0_i32_0 = arith.constant 0 : i32
    %c0_i32_1 = arith.constant 0 : i32
    return %c0_i32, %c0_i32_0 : i32, i32
  }
  func.func @transform_2(%arg0: i32) -> (i32, i32) {
    %c0_i32 = arith.constant 0 : i32
    %c0_i32_0 = arith.constant 0 : i32
    %c0_i32_1 = arith.constant 0 : i32
    return %c0_i32, %c0_i32_0 : i32, i32
  }
  func.func @transform_3(%arg0: i32) -> (i32, i32) {
    %c0_i32 = arith.constant 0 : i32
    %c0_i32_0 = arith.constant 0 : i32
    %c0_i32_1 = arith.constant 0 : i32
    return %c0_i32, %c0_i32_0 : i32, i32
  }
  func.func @transform_4(%arg0: i32) -> (i32, i32) {
    %c0_i32 = arith.constant 0 : i32
    %c0_i32_0 = arith.constant 0 : i32
    %c0_i32_1 = arith.constant 0 : i32
    return %c0_i32, %c0_i32_0 : i32, i32
  }
  func.func @transform_5(%arg0: i32) -> (i32, i32) {
    %c0_i32 = arith.constant 0 : i32
    %c0_i32_0 = arith.constant 0 : i32
    %c0_i32_1 = arith.constant 0 : i32
    return %c0_i32, %c0_i32_0 : i32, i32
  }
  func.func @transform_6(%arg0: i32) -> (i32, i32) {
    %c0_i32 = arith.constant 0 : i32
    %c0_i32_0 = arith.constant 0 : i32
    %c0_i32_1 = arith.constant 0 : i32
    return %c0_i32, %c0_i32_0 : i32, i32
  }
  func.func @transform_7(%arg0: i32) -> (i32, i32) {
    %c0_i32 = arith.constant 0 : i32
    %c0_i32_0 = arith.constant 0 : i32
    return %arg0, %c0_i32 : i32, i32
  }
}

</mosaic_0001>

<bundles_post_ra>
// kernel: maternkan_forward.1
= control target key start
LH: loop header
LB: loop body
LE: loop exit
PB: predicated region body
PF: predicated region fallthrough
CT: control target
= control target key end

     0   :  { %vm30_vm0 = vcmask 130048   ;;  %s604_s0 = inlined_call_operand.vmem [shape: f32[16,16], index: 0, kind: input, shape index: {}]   ;;  %s605_s1 = inlined_call_operand.vmem [shape: f32[1,16], index: 1, kind: input, shape index: {}]   ;;  %s606_s2 = inlined_call_operand.vmem [shape: f32[1,16], index: 2, kind: input, shape index: {}]   ;;  %s607_s3 = inlined_call_operand.vmem [shape: f32[1,128], index: 3, kind: input, shape index: {}]   ;;  %s608_s4 = inlined_call_operand.vmem [shape: bf16[128,32], index: 4, kind: input, shape index: {}]   ;;  %s609_s5 = inlined_call_operand.vmem [shape: bf16[16,32], index: 5, kind: input, shape index: {}]   ;;  %s610_s6 = inlined_call_operand.vmem [shape: f32[1,32], index: 6, kind: input, shape index: {}]   ;;  %s611_s7 = inlined_call_operand.hbm [shape: f32[16,32], index: 7, kind: output, shape index: {}]  }
   0x1   :  { %v510_v0 = vld [vmem:[%s604_s0] sm:$0xff] }
   0x2   :  { %v31_v1 = vsel %vm30_vm0, %v510_v0, 0.0 }
   0x3   :  { %32 = vadd.xlane.f32.xlu0 %v31_v1 }
   0x4   :  { %12 = vsyncpa [#allocation3], 0  ;;  %v517_v2 = vld [vmem:[%s604_s0 + $0x8] sm:$0xff]  ;;  %v456_v4 = vmov 16.0   ;;  %v408_v35 = vld [vmem:[%s605_s1] ss:$0 sm:$0xff] }
   0x5   :  { %v34_v3 = vsel %vm30_vm0, %v517_v2, 0.0  ;;  %412 = vrcp.f32 %v456_v4  ;;  %v409_v38 = vld [vmem:[%s606_s2] ss:$0 sm:$0xff]  ;;  %s457_s8 = smov 32   ;;  %s458_s1 = smov 16   ;;  %v395_v56 = vld [vmem:[%s608_s4 + $0x38] sm:$0xff] }
   0x6   :  { %s459_s2 = smov 64   ;;  %s460_s9 = smov 96   ;;  %v349_v49 = vmul.f32 -1.442695, %v510_v0  ;;  %v350_v50 = vmul.f32 -1.442695, %v517_v2  ;;  %309 = vmatpush.bf16.msra.mxu1 %v395_v56 }
   0x7   :  { %s461_s10 = smov 80   ;;  %s462_s11 = smov 48   ;;  %v394_v58 = vld [vmem:[%s608_s4 + $0x30] sm:$0xff]  ;;  %v393_v61 = vld [vmem:[%s608_s4 + $0x28] sm:$0xff] }
   0x8   :  { %s463_s12 = smov 112  }
   0xa   :  { %310 = vmatpush.bf16.msra.mxu1 %v394_v58 }
   0xb   :  { %35 = vadd.xlane.f32.xlu0 %v34_v3  ;;  %v413_v5 = vpop.eup %412  ;;  %v392_v3 = vld [vmem:[%s608_s4 + $0x20] sm:$0xff] }
   0xc   :  { %v38_v6 = vmul.f32 16.0, %v413_v5  ;;  %vm42_vm1 = vweird.f32 %v413_v5 }
   0xe   :  { %v39_v7 = vsub.f32 1.0, %v38_v6  ;;  %311 = vmatpush.bf16.msra.mxu1 %v393_v61 }
  0x10   :  { %v40_v8 = vmul.f32 %v413_v5, %v39_v7 }
  0x12   :  { %v41_v9 = vadd.f32 %v413_v5, %v40_v8  ;;  %312 = vmatpush.bf16.msra.mxu1 %v392_v3 }
  0x14   :  { %v43_v10 = vsel %vm42_vm1, %v413_v5, %v41_v9  ;;  %v391_v9 = vld [vmem:[%s608_s4 + $0x18] sm:$0xff]  ;;  %vm140_vm1 = vcmask 261120  }
  0x16   :  { %313 = vmatpush.bf16.msra.mxu1 %v391_v9 }
  0x76   :  { %v33_v11 = vpop.xlane.xlu0 %32 }
  0x77   :  { %v44_v12 = vmul.f32 %v43_v10, %v33_v11 }
  0x79   :  { %v46_v13 = vsub.f32 %v510_v0, %v44_v12 }
  0x7b   :  { %v48_v14 = vmul.f32 %v46_v13, %v46_v13 }
  0x7d   :  { %v50_v15 = vsel %vm30_vm0, %v48_v14, 0.0 }
  0x7e   :  { %51 = vadd.xlane.f32.xlu1 %v50_v15  ;;  %v36_v16 = vpop.xlane.xlu0 %35 }
  0x7f   :  { %v45_v17 = vmul.f32 %v43_v10, %v36_v16 }
  0x81   :  { %v47_v18 = vsub.f32 %v517_v2, %v45_v17 }
  0x83   :  { %v49_v19 = vmul.f32 %v47_v18, %v47_v18 }
  0x85   :  { %v53_v20 = vsel %vm30_vm0, %v49_v19, 0.0  ;;  %v396_v19 = vld [vmem:[%s609_s5] sm:$0xff] }
  0x86   :  { %54 = vadd.xlane.f32.xlu1 %v53_v20  ;;  %v390_v20 = vld [vmem:[%s608_s4 + $0x10] sm:$0xff]  ;;  %254 = vmatpush.bf16.msra.mxu0 %v396_v19 }
  0x87   :  { %314 = vmatpush.bf16.msra.mxu1 %v390_v20 }
  0xf1   :  { %v52_v21 = vpop.xlane.xlu1 %51 }
  0xf2   :  { %v56_v22 = vmul.f32 %v52_v21, %v43_v10 }
  0xf4   :  { %v58_v23 = vadd.f32 1e-05, %v56_v22 }
  0xf6   :  { %414 = vrsqrt.f32 %v58_v23  ;;  %vm66_vm3 = vweird.f32 %v58_v23 }
  0xf9   :  { %v55_v24 = vpop.xlane.xlu1 %54 }
  0xfa   :  { %v57_v25 = vmul.f32 %v55_v24, %v43_v10 }
  0xfc   :  { %v415_v26 = vpop.eup %414  ;;  %v59_v27 = vadd.f32 1e-05, %v57_v25 }
  0xfd   :  { %v61_v28 = vmul.f32 %v415_v26, %v58_v23  ;;  %vm67_vm2 = vweird.f32 %v415_v26 }
  0xfe   :  { %416 = vrsqrt.f32 %v59_v27  ;;  %vm68_vm4 = vmor %vm66_vm3, %vm67_vm2  ;;  %vm76_vm6 = vweird.f32 %v59_v27  ;;  %vm143_vm2 = vcmask 392192   ;;  %vm146_vm3 = vcmask 523264  }
  0xff   :  { %v62_v29 = vmul.f32 %v415_v26, %v61_v28  ;;  %418 = vpow2.f32 %v349_v49 }
 0x100   :  { %420 = vpow2.f32 %v350_v50 }
 0x101   :  { %v63_v30 = vmul.f32 0.5, %v62_v29 }
 0x103   :  { %v64_v31 = vsub.f32 1.5, %v63_v30 }
 0x104   :  { %v417_v32 = vpop.eup %416 }
 0x105   :  { %v65_v33 = vmul.f32 %v415_v26, %v64_v31  ;;  %v71_v34 = vmul.f32 %v417_v32, %v59_v27  ;;  %vm77_vm5 = vweird.f32 %v417_v32  ;;  %v419_v52 = vpop.eup %418 }
 0x106   :  { %vm78_vm7 = vmor %vm76_vm6, %vm77_vm5  ;;  %v421_v53 = vpop.eup %420  ;;  %v201_v54 = vadd.f32 1.0, %v419_v52  ;;  %vm152_vm5 = vcmask 785408   ;;  %vm155_vm6 = vcmask 916480  }
 0x107   :  { %v69_v36 = vsel %vm68_vm4, %v415_v26, %v65_v33  ;;  %v72_v37 = vmul.f32 %v417_v32, %v71_v34  ;;  %v202_v55 = vadd.f32 1.0, %v421_v53  ;;  %v389_v26 = vld [vmem:[%s608_s4 + $0x8] sm:$0xff]  ;;  %vm149_vm4 = vcmask 654336  }
 0x108   :  { %v80_v39 = vmul.f32 %v69_v36, %v46_v13  ;;  %422 = vrcp.f32 %v201_v54  ;;  %v214_v10 = vand.u32 2147483648, %v201_v54  ;;  %vm208_vm8 = vweird.f32 %v201_v54  ;;  %315 = vmatpush.bf16.msra.mxu1 %v389_v26 }
 0x109   :  { %v73_v40 = vmul.f32 0.5, %v72_v37  ;;  %424 = vrcp.f32 %v202_v55  ;;  %v229_v11 = vand.u32 2147483648, %v202_v55  ;;  %v212_v14 = vand.u32 2147483647, %v201_v54 }
 0x10a   :  { %v86_v41 = vmul.f32 %v408_v35, %v80_v39  ;;  %v215_v15 = vor.u32 1.1754944e-38, %v214_v10  ;;  %vm223_vm11 = vweird.f32 %v202_v55 }
 0x10b   :  { %v74_v42 = vsub.f32 1.5, %v73_v40  ;;  %vm213_vm13 = vcmp.eq.f32.partialorder %v212_v14, 8.507059e+37  ;;  %v230_v21 = vor.u32 1.1754944e-38, %v229_v11 }
 0x10c   :  { %v531_v43 = vadd.f32 %v409_v38, %v86_v41 }
 0x10d   :  { %v75_v44 = vmul.f32 %v417_v32, %v74_v42  ;;  %v410_v42 = vld [vmem:[%s607_s3] ss:$0 sm:$0xff] }
 0x10e   :  { %102 = vrot.lane.b32.xlu0 %v531_v43, %s457_s8  ;;  %96 = vrot.lane.b32.xlu2 %v531_v43, %s458_s1  ;;  %v423_v59 = vpop.eup %422 }
 0x10f   :  { %v79_v45 = vsel %vm78_vm7, %v417_v32, %v75_v44  ;;  %v425_v60 = vpop.eup %424  ;;  %v204_v63 = vmul.f32 %v423_v59, %v201_v54  ;;  %vm209_vm9 = vweird.f32 %v423_v59  ;;  %v388_v32 = vld [vmem:[%s608_s4] sm:$0xff] }
 0x110   :  { %v81_v46 = vmul.f32 %v79_v45, %v47_v18  ;;  %v219_v1 = vmul.f32 %v425_v60, %v202_v55  ;;  %vm210_vm10 = vmor %vm208_vm8, %vm209_vm9  ;;  %vm224_vm12 = vweird.f32 %v425_v60  ;;  %v227_v18 = vand.u32 2147483647, %v202_v55  ;;  %316 = vmatpush.bf16.msra.mxu1 %v388_v32 }
 0x111   :  { %v205_v4 = vsub.f32 1.0, %v204_v63  ;;  %vm225_vm14 = vmor %vm223_vm11, %vm224_vm12 }
 0x112   :  { %v87_v47 = vmul.f32 %v408_v35, %v81_v46  ;;  %v220_v5 = vsub.f32 1.0, %v219_v1  ;;  %vm228_vm15 = vcmp.eq.f32.partialorder %v227_v18, 8.507059e+37 }
 0x113   :  { %v206_v6 = vmul.f32 %v423_v59, %v205_v4 }
 0x114   :  { %v535_v48 = vadd.f32 %v409_v38, %v87_v47  ;;  %v221_v7 = vmul.f32 %v425_v60, %v220_v5 }
 0x115   :  { %v207_v13 = vadd.f32 %v423_v59, %v206_v6 }
 0x116   :  { %116 = vrot.lane.b32.xlu0 %v535_v48, %s459_s2  ;;  %104 = vrot.lane.b32.xlu1 %v535_v48, %s457_s8  ;;  %v222_v16 = vadd.f32 %v425_v60, %v221_v7  ;;  %s464_s8 = smov [#allocation2]  }
 0x117   :  { %98 = vrot.lane.b32.xlu2 %v535_v48, %s458_s1  ;;  %v211_v17 = vsel %vm210_vm10, %v423_v59, %v207_v13  ;;  %s335_s1 = sshll.u32 %s464_s8, 4  ;;  %s336_s1 = int_to_ptr.vmem [resolvable:$true] %s335_s1 }
 0x118   :  { %v216_v22 = vsel %vm213_vm13, %v215_v15, %v211_v17  ;;  %v226_v23 = vsel %vm225_vm14, %v425_v60, %v222_v16 }
 0x119   :  { %v231_v24 = vsel %vm228_vm15, %v230_v21, %v226_v23  ;;  %v233_v25 = vmul.f32 %v216_v22, %v510_v0 }
 0x11a   :  { %v234_v27 = vmul.f32 %v231_v24, %v517_v2 }
 0x11c   :  { %v235_v31 = vpack.c.bf16 %v234_v27, %v233_v25 }
 0x11e   :  { %126 = vrot.lane.b32.xlu0 %v531_v43, %s460_s9  ;;  %122 = vrot.lane.b32.xlu1 %v535_v48, %s461_s10 }
 0x11f   :  { %108 = vrot.lane.b32.xlu2 %v531_v43, %s462_s11  ;;  %355 = vmatmul.msk.bf16.vlgmr.msra.gmra.mxu0 %vm30_vm0, %v235_v31 }
 0x126   :  { %134 = vrot.lane.b32.xlu0 %v535_v48, %s463_s12  ;;  %132 = vrot.lane.b32.xlu1 %v531_v43, %s463_s12 }
 0x127   :  { %110 = vrot.lane.b32.xlu2 %v535_v48, %s462_s11  ;;  %s466_s11 = smov 8  }
 0x12f   :  { %114 = vrot.lane.b32.xlu2 %v531_v43, %s459_s2 }
 0x137   :  { %120 = vrot.lane.b32.xlu2 %v531_v43, %s461_s10  ;;  %s337_s10 = sshll.u32 %s611_s7, 4  ;;  %s338_s10 = int_to_ptr.hbm [resolvable:$true] %s337_s10 }
 0x13f   :  { %128 = vrot.lane.b32.xlu2 %v535_v48, %s460_s9 }
 0x168   :  { %v551_v51 = vpop.permute.xlu2 %96 }
 0x169   :  { %v138_v0 = vsel %vm30_vm0, %v531_v43, %v551_v51 }
 0x171   :  { %v556_v57 = vpop.permute.xlu2 %98 }
 0x172   :  { %v139_v35 = vsel %vm30_vm0, %v535_v48, %v556_v57 }
 0x179   :  { %v109_v62 = vpop.permute.xlu2 %108 }
 0x180   :  { %v103_v8 = vpop.permute.xlu0 %102 }
 0x181   :  { %v111_v12 = vpop.permute.xlu2 %110  ;;  %v141_v33 = vsel %vm140_vm1, %v138_v0, %v103_v8  ;;  %v411_v8 = vld [vmem:[%s610_s6] ss:$0 sm:$0xff]  ;;  %s465_s6 = smov 128  }
 0x182   :  { %v144_v38 = vsel %vm143_vm2, %v141_v33, %v109_v62 }
 0x188   :  { %v105_v28 = vpop.permute.xlu1 %104  ;;  %v117_v29 = vpop.permute.xlu0 %116 }
 0x189   :  { %v115_v30 = vpop.permute.xlu2 %114  ;;  %v142_v37 = vsel %vm140_vm1, %v139_v35, %v105_v28 }
 0x18a   :  { %v147_v39 = vsel %vm146_vm3, %v144_v38, %v115_v30  ;;  %v145_v40 = vsel %vm143_vm2, %v142_v37, %v111_v12 }
 0x18b   :  { %v148_v43 = vsel %vm146_vm3, %v145_v40, %v117_v29 }
 0x190   :  { %v123_v2 = vpop.permute.xlu1 %122  ;;  %v127_v34 = vpop.permute.xlu0 %126 }
 0x191   :  { %v121_v36 = vpop.permute.xlu2 %120  ;;  %v151_v47 = vsel %vm149_vm4, %v148_v43, %v123_v2 }
 0x192   :  { %v150_v41 = vsel %vm149_vm4, %v147_v39, %v121_v36 }
 0x193   :  { %v153_v44 = vsel %vm152_vm5, %v150_v41, %v127_v34 }
 0x198   :  { %v133_v45 = vpop.permute.xlu1 %132  ;;  %v135_v46 = vpop.permute.xlu0 %134 }
 0x199   :  { %v156_v48 = vsel %vm155_vm6, %v153_v44, %v133_v45  ;;  %v129_v49 = vpop.permute.xlu2 %128 }
 0x19a   :  { %v162_v50 = vsub.f32 %v156_v48, %v410_v42  ;;  %v154_v51 = vsel %vm152_vm5, %v151_v47, %v129_v49 }
 0x19b   :  { %v157_v52 = vsel %vm155_vm6, %v154_v51, %v135_v46 }
 0x19c   :  { %v164_v53 = vand.u32 2147483647, %v162_v50  ;;  %v163_v54 = vsub.f32 %v157_v52, %v410_v42  ;;  %v256_v7 = vpop.f32.mrf.mxu0 }
 0x19e   :  { %v166_v55 = vmul.f32 1.7320508, %v164_v53  ;;  %v165_v56 = vand.u32 2147483647, %v163_v54 }
 0x1a0   :  { %v170_v57 = vsub.f32 0.0, %v166_v55  ;;  %v167_v58 = vmul.f32 1.7320508, %v165_v56  ;;  %v168_v62 = vadd.f32 1.0, %v166_v55 }
 0x1a2   :  { %v172_v59 = vmul.f32 1.442695, %v170_v57  ;;  %v171_v60 = vsub.f32 0.0, %v167_v58  ;;  %v169_v1 = vadd.f32 1.0, %v167_v58 }
 0x1a4   :  { %426 = vpow2.f32 %v172_v59  ;;  %v174_v61 = vmul.f32 1.442695, %v171_v60  ;;  %v258_v12 = vpop.f32.mrf.mxu0 }
 0x1a6   :  { %428 = vpow2.f32 %v174_v61 }
 0x1aa   :  { %v427_v63 = vpop.eup %426 }
 0x1ab   :  { %v176_v3 = vmul.f32 %v427_v63, %v168_v62 }
 0x1ac   :  { %v429_v4 = vpop.eup %428 }
 0x1ad   :  { %v177_v5 = vmul.f32 %v429_v4, %v169_v1 }
 0x1af   :  { %v178_v6 = vpack.c.bf16 %v177_v5, %v176_v3 }
 0x1b1   :  { %317 = vmatmul.bf16.vlgmr.msra.gmra.mxu1 %v178_v6 }
 0x22e   :  { %v318_v9 = vpop.f32.mrf.mxu1 }
 0x22f   :  { %v319_v10 = vadd.f32 %v318_v9, %v256_v7 }
 0x231   :  { %v327_v11 = vadd.f32 %v411_v8, %v319_v10 }
 0x233   :  { %329 = vst.msk [vmem:[#allocation2] sm:$0xff] %vm140_vm1, %v327_v11 }
 0x236   :  { %v320_v13 = vpop.f32.mrf.mxu1 }
 0x237   :  { %v321_v14 = vadd.f32 %v320_v13, %v258_v12 }
 0x239   :  { %v328_v15 = vadd.f32 %v411_v8, %v321_v14 }
 0x23b   :  { %330 = vst.msk [vmem:[#allocation2 + $0x8] sm:$0xff] %vm140_vm1, %v328_v15 }
 0x23c   :  { %343 = dma.vmem_to_hbm [thread:$0]  %s336_s1, 256, %s338_s10, [#allocation3], %s465_s6, %s465_s6, %s466_s11  }
 0x23d   :  { %454 = dma.done.wait [#allocation3], 256  }
 0x23e   :  { %455 = vsyncadd [#allocation3], 4294967040 }
 0x23f   :  { %348 = vsyncpa [#allocation3], 1 }

</bundles_post_ra>
